<compile_context>
chip_gen: v5e
topology: v5e:2x2
jax: 0.10.0
libtpu: 0.0.40
codegen_flags: <defaults>
</compile_context>

<pallas_src>
import numpy as np
import jax
import jax.numpy as jnp
from jax.experimental import pallas as pl
from jax.experimental.pallas import tpu as pltpu


def _bilinear_matrix(in_size: int, out_size: int) -> np.ndarray:
    """(out_size, in_size) matrix reproducing F.interpolate(mode='bilinear',
    align_corners=False) along one axis (bilinear resize is separable)."""
    scale = in_size / out_size
    mat = np.zeros((out_size, in_size), dtype=np.float32)
    for o in range(out_size):
        src = (o + 0.5) * scale - 0.5
        src = max(src, 0.0)
        i0 = min(int(np.floor(src)), in_size - 1)
        i1 = min(i0 + 1, in_size - 1)
        w1 = src - i0
        mat[o, i0] += 1.0 - w1
        mat[o, i1] += w1
    return mat


def _combined_resize_matrix(h_in, w_in, h_out, w_out) -> np.ndarray:
    """(h_in*w_in, h_out*w_out) matrix: x_flat @ R == flatten(bilinear(x))."""
    rh = _bilinear_matrix(h_in, h_out)          # (h_out, h_in)
    rw = _bilinear_matrix(w_in, w_out)          # (w_out, w_in)
    # kron(rh, rw)[h*W + w, h'*W_in + w'] = rh[h, h'] * rw[w, w']
    return np.ascontiguousarray(np.kron(rh, rw).T)


def _pick_h_tile(H: int, W: int) -> int:
    """Largest TH < H dividing H with TH*W a multiple of 128 (lane-dense tiles,
    >=2 grid steps per batch item); fall back to the full height."""
    for th in range(H // 2, 0, -1):
        if H % th == 0 and (th * W) % 128 == 0:
            return th
    return H


def make_fusion_kernel(unet_dims, passthrough, gat_dim):
    n_scales = len(unet_dims)
    n_resized = sum(0 if p else 1 for p in passthrough)
    c_offsets = [0]
    for c in unet_dims:
        c_offsets.append(c_offsets[-1] + c)
    c_unet = c_offsets[-1]
    c_total = c_unet + gat_dim

    def kernel(*refs):
        x_refs = refs[:n_scales]                       # per-scale (1, C_s, .)
        r_refs = refs[n_scales:n_scales + n_resized]   # (H_s*W_s, TH*W) bf16
        rmap_ref = refs[n_scales + n_resized]          # (1, 1, TH*W) int32
        fgt_ref = refs[n_scales + n_resized + 1]       # (D_gat, N_regions) bf16
        out_ref = refs[n_scales + n_resized + 2]       # (1, C_total, TH*W) f32

        # ---- U-Net multi-scale features: single-matmul resize or plain copy ----
        r_i = 0
        for s in range(n_scales):
            lo, hi = c_offsets[s], c_offsets[s + 1]
            if passthrough[s]:
                # Already at target resolution: lane-dense copy of this tile.
                out_ref[0, lo:hi] = x_refs[s][0].astype(out_ref.dtype)
            else:
                # (C_s, H_s*W_s) @ (H_s*W_s, TH*W) -> (C_s, TH*W); channels on M,
                # lane-dense free dim, f32 accumulation on the MXU.
                y = jnp.dot(x_refs[s][0], r_refs[r_i][...],
                            preferred_element_type=jnp.float32)
                out_ref[0, lo:hi] = y.astype(out_ref.dtype)
                r_i += 1

        # ---- region-level GAT embeddings -> pixel level (masked gather) ----
        # Out-of-range / negative ids hit no iota row -> all-zero column, which
        # matches the PyTorch valid_mask + zeros behaviour.
        idx = rmap_ref[0]                              # (1, TH*W) int32
        n_regions = fgt_ref.shape[1]
        thw = idx.shape[1]
        region_ids = jax.lax.broadcasted_iota(jnp.int32, (n_regions, thw), 0)
        onehot = (idx == region_ids).astype(fgt_ref.dtype)      # (N, TH*W)
        gat = jnp.dot(fgt_ref[...], onehot,
                      preferred_element_type=jnp.float32)       # (D, TH*W)
        out_ref[0, c_unet:c_total] = gat.astype(out_ref.dtype)

    return kernel, c_total


def feature_fusion(f_u_list, f_g, region_to_pixel_map, target_spatial_size=None):
    """fusion_method='concat' forward pass. Returns (B, C_fused, H, W) float32."""
    B = int(f_u_list[0].shape[0])
    if target_spatial_size is None:
        target_spatial_size = (int(f_u_list[0].shape[2]), int(f_u_list[0].shape[3]))
    H, W = target_spatial_size
    HW = H * W
    gat_dim = int(f_g.shape[1])
    n_regions = int(f_g.shape[0])
    unet_dims = [int(f.shape[1]) for f in f_u_list]

    TH = _pick_h_tile(H, W)
    n_htiles = H // TH
    THW = TH * W

    passthrough = [(int(f.shape[2]), int(f.shape[3])) == (H, W) for f in f_u_list]

    # ---- wrapper-side layout plumbing (one-time, outside the hot loop) ----
    x_flat = []    # per-scale (B, C_s, H_s*W_s)
    r_mats = []    # per resized scale: combined (H_s*W_s, H*W) matrix, bf16
    for f, p in zip(f_u_list, passthrough):
        C, Hi, Wi = int(f.shape[1]), int(f.shape[2]), int(f.shape[3])
        xf = f.reshape(B, C, Hi * Wi)
        if p:
            x_flat.append(xf.astype(jnp.float32))      # exact passthrough
        else:
            x_flat.append(xf.astype(jnp.bfloat16))     # bf16 MXU path
            r_mats.append(jnp.asarray(
                _combined_resize_matrix(Hi, Wi, H, W), dtype=jnp.bfloat16))

    rmap = region_to_pixel_map.reshape(B, 1, HW).astype(jnp.int32)
    fg_t = jnp.transpose(f_g, (1, 0)).astype(jnp.bfloat16)      # (D_gat, N)

    kernel, c_total = make_fusion_kernel(unet_dims, passthrough, gat_dim)

    in_specs = []
    for xf, p in zip(x_flat, passthrough):
        C, HWs = int(xf.shape[1]), int(xf.shape[2])
        if p:
            # Stream only this output tile's slab of the full-res scale.
            in_specs.append(pl.BlockSpec((1, C, THW), lambda b, h: (b, 0, h)))
        else:
            # Resized scales: whole (small) source image each tile.
            in_specs.append(pl.BlockSpec((1, C, HWs), lambda b, h: (b, 0, 0)))
    for m in r_mats:
        HWs = int(m.shape[0])
        in_specs.append(pl.BlockSpec((HWs, THW), lambda b, h: (0, h)))
    in_specs.append(pl.BlockSpec((1, 1, THW), lambda b, h: (b, 0, h)))
    in_specs.append(pl.BlockSpec((gat_dim, n_regions), lambda b, h: (0, 0)))

    out_spec = pl.BlockSpec((1, c_total, THW), lambda b, h: (b, 0, h))

    out_flat = pl.pallas_call(
        kernel,
        out_shape=jax.ShapeDtypeStruct((B, c_total, HW), jnp.float32),
        grid_spec=pltpu.PrefetchScalarGridSpec(
            num_scalar_prefetch=0,
            grid=(B, n_htiles),
            in_specs=in_specs,
            out_specs=out_spec,
        ),
        compiler_params=pltpu.CompilerParams(
            dimension_semantics=("parallel", "parallel"),
            vmem_limit_bytes=32 * 1024 * 1024,
        ),
    )(*x_flat, *r_mats, rmap, fg_t)

    # Free trailing-dim reshape back to NCHW.
    return out_flat.reshape(B, c_total, H, W)


def feature_fusion_ref(f_u_list, f_g, region_to_pixel_map, H, W):
    """Pure-JAX f32 reference matching the PyTorch module (concat fusion)."""
    B = f_u_list[0].shape[0]
    processed = []
    for f in f_u_list:
        Hi, Wi = int(f.shape[2]), int(f.shape[3])
        if (Hi, Wi) == (H, W):
            processed.append(f)
        else:
            rh = jnp.asarray(_bilinear_matrix(Hi, H))
            rw = jnp.asarray(_bilinear_matrix(Wi, W))
            y = jnp.einsum('oh,bchw->bcow', rh, f)
            y = jnp.einsum('pw,bchw->bchp', rw, y)
            processed.append(y)
    f_u_combined = jnp.concatenate(processed, axis=1)

    idx = region_to_pixel_map.reshape(B, H * W)
    valid = (idx >= 0) & (idx < f_g.shape[0])
    safe = jnp.where(valid, idx, 0)
    gathered = f_g[safe]                                    # (B, HW, D)
    gathered = jnp.where(valid[..., None], gathered, 0.0)
    f_g_pixel = jnp.transpose(gathered, (0, 2, 1)).reshape(B, f_g.shape[1], H, W)
    return jnp.concatenate([f_u_combined, f_g_pixel], axis=1)


if __name__ == "__main__":
    key = jax.random.PRNGKey(0)
    k1, k2, k3, k4 = jax.random.split(key, 4)

    B, H, W = 2, 16, 16
    n_regions, d_gat = 6, 32

    # Two U-Net scales: one already at target resolution, one needing
    # bilinear upsampling 8x8 -> 16x16.
    f_u0 = jax.random.normal(k1, (B, 4, 16, 16), dtype=jnp.float32)
    f_u1 = jax.random.normal(k2, (B, 8, 8, 8), dtype=jnp.float32)
    # Per-region GAT embeddings + region->pixel map with invalid ids
    # (negative / >= n_regions) to exercise the masking path.
    f_g = jax.random.normal(k3, (n_regions, d_gat), dtype=jnp.float32)
    region_map = jax.random.randint(k4, (B, H, W), -1, n_regions + 2,
                                    dtype=jnp.int32)

    out = feature_fusion([f_u0, f_u1], f_g, region_map, (H, W))
    out = jax.block_until_ready(out)

    assert out.shape == (B, 4 + 8 + d_gat, H, W), out.shape
    ref = feature_fusion_ref([f_u0, f_u1], f_g, region_map, H, W)
    # bf16 inputs on the MXU path (f32 accumulation) -> bf16-rounding tolerance.
    np.testing.assert_allclose(np.asarray(out), np.asarray(ref),
                               rtol=2e-2, atol=3e-2)
    print("KERNEL_OK")
</pallas_src>

<mosaic_0001>
module attributes {stable_mosaic.version = 11 : i64} {
  func.func @kernel(%arg0: i32, %arg1: i32, %arg2: memref<1x4x128xf32, #tpu.memory_space<vmem>>, %arg3: memref<1x8x64xbf16, #tpu.memory_space<vmem>>, %arg4: memref<64x128xbf16, #tpu.memory_space<vmem>>, %arg5: memref<1x1x128xi32, #tpu.memory_space<vmem>>, %arg6: memref<32x6xbf16, #tpu.memory_space<vmem>>, %arg7: memref<1x44x128xf32, #tpu.memory_space<vmem>>) attributes {dimension_semantics = [#tpu.dimension_semantics<parallel>, #tpu.dimension_semantics<parallel>], iteration_bounds = array<i64: 2, 2>, scalar_prefetch = 0 : i64, scratch_operands = 0 : i64, tpu.core_type = #tpu.core_type<tc>, window_params = [{transform_indices = @transform_0, window_bounds = array<i64: 1, 4, 128>}, {transform_indices = @transform_1, window_bounds = array<i64: 1, 8, 64>}, {transform_indices = @transform_2, window_bounds = array<i64: 64, 128>}, {transform_indices = @transform_3, window_bounds = array<i64: 1, 1, 128>}, {pipeline_mode = #tpu.pipeline_mode<synchronous>, transform_indices = @transform_4, window_bounds = array<i64: 32, 6>}, {transform_indices = @transform_5, window_bounds = array<i64: 1, 44, 128>}]} {
    %c0 = arith.constant 0 : index
    %c0_0 = arith.constant 0 : index
    %c0_1 = arith.constant 0 : index
    %0 = vector.load %arg2[%c0, %c0_0, %c0_1] : memref<1x4x128xf32, #tpu.memory_space<vmem>>, vector<1x4x128xf32>
    %1 = vector.shape_cast %0 : vector<1x4x128xf32> to vector<4x128xf32>
    %c0_2 = arith.constant 0 : index
    %c0_3 = arith.constant 0 : index
    %c0_4 = arith.constant 0 : index
    %2 = vector.load %arg7[%c0_2, %c0_3, %c0_4] : memref<1x44x128xf32, #tpu.memory_space<vmem>>, vector<1x4x128xf32>
    %3 = vector.shape_cast %2 : vector<1x4x128xf32> to vector<4x128xf32>
    %4 = vector.shape_cast %1 : vector<4x128xf32> to vector<1x4x128xf32>
    tpu.vector_store %arg7[%c0_2, %c0_3, %c0_4], %4 {strides = array<i32>} : memref<1x44x128xf32, #tpu.memory_space<vmem>>, vector<1x4x128xf32>,
    %c0_5 = arith.constant 0 : index
    %c0_6 = arith.constant 0 : index
    %c0_7 = arith.constant 0 : index
    %5 = vector.load %arg3[%c0_5, %c0_6, %c0_7] : memref<1x8x64xbf16, #tpu.memory_space<vmem>>, vector<1x8x64xbf16>
    %6 = vector.shape_cast %5 : vector<1x8x64xbf16> to vector<8x64xbf16>
    %c0_8 = arith.constant 0 : index
    %c0_9 = arith.constant 0 : index
    %7 = vector.load %arg4[%c0_8, %c0_9] : memref<64x128xbf16, #tpu.memory_space<vmem>>, vector<64x128xbf16>
    %cst = arith.constant dense<0.000000e+00> : vector<8x128xf32>
    %8 = tpu.matmul %6, %7, %cst {dimension_numbers = #tpu.dot_dimension_numbers<[1], [0], [0], [1], [0, 0, 1, 1], [], []>} : vector<8x64xbf16>, vector<64x128xbf16>, vector<8x128xf32> -> vector<8x128xf32>
    %c0_10 = arith.constant 0 : index
    %c4 = arith.constant 4 : index
    %c0_11 = arith.constant 0 : index
    %9 = vector.load %arg7[%c0_10, %c4, %c0_11] : memref<1x44x128xf32, #tpu.memory_space<vmem>>, vector<1x8x128xf32>
    %10 = vector.shape_cast %9 : vector<1x8x128xf32> to vector<8x128xf32>
    %11 = vector.shape_cast %8 : vector<8x128xf32> to vector<1x8x128xf32>
    tpu.vector_store %arg7[%c0_10, %c4, %c0_11], %11 {strides = array<i32>} : memref<1x44x128xf32, #tpu.memory_space<vmem>>, vector<1x8x128xf32>,
    %c0_12 = arith.constant 0 : index
    %c0_13 = arith.constant 0 : index
    %c0_14 = arith.constant 0 : index
    %12 = vector.load %arg5[%c0_12, %c0_13, %c0_14] : memref<1x1x128xi32, #tpu.memory_space<vmem>>, vector<1x1x128xi32>
    %13 = vector.shape_cast %12 : vector<1x1x128xi32> to vector<1x128xi32>
    %14 = tpu.iota {dimensions = array<i32: 0>} : vector<6x128xi32>
    %15 = vector.broadcast %13 : vector<1x128xi32> to vector<6x128xi32>
    %16 = arith.cmpi eq, %15, %14 : vector<6x128xi32>
    %17 = arith.extui %16 : vector<6x128xi1> to vector<6x128xi32>
    %18 = arith.sitofp %17 : vector<6x128xi32> to vector<6x128xf32>
    %19 = arith.truncf %18 : vector<6x128xf32> to vector<6x128xbf16>
    %c0_15 = arith.constant 0 : index
    %c0_16 = arith.constant 0 : index
    %20 = vector.load %arg6[%c0_15, %c0_16] : memref<32x6xbf16, #tpu.memory_space<vmem>>, vector<32x6xbf16>
    %cst_17 = arith.constant dense<0.000000e+00> : vector<32x128xf32>
    %21 = tpu.matmul %20, %19, %cst_17 {dimension_numbers = #tpu.dot_dimension_numbers<[1], [0], [0], [1], [0, 0, 1, 1], [], []>} : vector<32x6xbf16>, vector<6x128xbf16>, vector<32x128xf32> -> vector<32x128xf32>
    %c0_18 = arith.constant 0 : index
    %c12 = arith.constant 12 : index
    %c0_19 = arith.constant 0 : index
    %22 = vector.load %arg7[%c0_18, %c12, %c0_19] : memref<1x44x128xf32, #tpu.memory_space<vmem>>, vector<1x32x128xf32>
    %23 = vector.shape_cast %22 : vector<1x32x128xf32> to vector<32x128xf32>
    %24 = vector.shape_cast %21 : vector<32x128xf32> to vector<1x32x128xf32>
    tpu.vector_store %arg7[%c0_18, %c12, %c0_19], %24 {strides = array<i32>} : memref<1x44x128xf32, #tpu.memory_space<vmem>>, vector<1x32x128xf32>,
    return
  }
  func.func @transform_0(%arg0: i32, %arg1: i32) -> (i32, i32, i32) {
    %c0_i32 = arith.constant 0 : i32
    %c0_i32_0 = arith.constant 0 : i32
    return %arg0, %c0_i32, %arg1 : i32, i32, i32
  }
  func.func @transform_1(%arg0: i32, %arg1: i32) -> (i32, i32, i32) {
    %c0_i32 = arith.constant 0 : i32
    %c0_i32_0 = arith.constant 0 : i32
    %c0_i32_1 = arith.constant 0 : i32
    return %arg0, %c0_i32, %c0_i32_0 : i32, i32, i32
  }
  func.func @transform_2(%arg0: i32, %arg1: i32) -> (i32, i32) {
    %c0_i32 = arith.constant 0 : i32
    %c0_i32_0 = arith.constant 0 : i32
    return %c0_i32, %arg1 : i32, i32
  }
  func.func @transform_3(%arg0: i32, %arg1: i32) -> (i32, i32, i32) {
    %c0_i32 = arith.constant 0 : i32
    %c0_i32_0 = arith.constant 0 : i32
    return %arg0, %c0_i32, %arg1 : i32, i32, i32
  }
  func.func @transform_4(%arg0: i32, %arg1: i32) -> (i32, i32) {
    %c0_i32 = arith.constant 0 : i32
    %c0_i32_0 = arith.constant 0 : i32
    %c0_i32_1 = arith.constant 0 : i32
    return %c0_i32, %c0_i32_0 : i32, i32
  }
  func.func @transform_5(%arg0: i32, %arg1: i32) -> (i32, i32, i32) {
    %c0_i32 = arith.constant 0 : i32
    %c0_i32_0 = arith.constant 0 : i32
    return %arg0, %c0_i32, %arg1 : i32, i32, i32
  }
}

</mosaic_0001>

<bundles_post_ra>
// kernel: tpu_custom_call.1
= control target key start
LH: loop header
LB: loop body
LE: loop exit
PB: predicated region body
PF: predicated region fallthrough
CT: control target
= control target key end

     0   :  { %s1304_s0 = inlined_call_operand.vmem [shape: f32[2,4,256], index: 0, kind: input, shape index: {}]   ;;  %s1305_s1 = inlined_call_operand.hbm [shape: bf16[2,8,64], index: 1, kind: input, shape index: {}]   ;;  %s1306_s2 = inlined_call_operand.hbm [shape: bf16[64,256], index: 2, kind: input, shape index: {}]   ;;  %s1307_s3 = inlined_call_operand.vmem [shape: s32[2,1,256], index: 3, kind: input, shape index: {}]   ;;  %s1308_s4 = inlined_call_operand.vmem [shape: bf16[32,6], index: 4, kind: input, shape index: {}]   ;;  %s1309_s5 = inlined_call_operand.vmem [shape: f32[2,44,256], index: 5, kind: output, shape index: {}]  }
   0x1   :  { %1317 = sst [smem:[#allocation17_spill]] %s1305_s1 }
   0x2   :  { %1318 = sst [smem:[#allocation18_spill]] %s1308_s4 }
   0x3   :  { %1319 = sst [smem:[#allocation19_spill]] %s1309_s5 }
   0x4   :  { %10 = vsyncpa [#allocation3], 0 }
   0x5   :  { %12 = vsyncpa [#allocation3 + $0x1], 0 }
   0x6   :  { %13 = vsyncpa [#allocation5], 0 }
   0x7   :  { %15 = vsyncpa [#allocation5 + $0x1], 0  ;;  %s1038_s18 = smov 0   ;;  %s1040_s19 = smov 0  }
   0x8   :  { %s1042_s20 = smov 0   ;;  %s1044_s21 = smov 0  }
   0x9   :  { %s1046_s22 = smov 0   ;;  %s1048_s23 = smov 0  }
   0xa   :  { %s1050_s24 = smov 0   ;;  %s1052_s25 = smov 0  }
   0xb   :  { %s1054_s26 = smov 0   ;;  %s1056_s27 = smov 0  }
   0xc   :  { %s1058_s28 = smov 0   ;;  %s1060_s29 = smov 0  }
   0xd   :  { %s1062_s30 = smov 0  }
   0xe LB: > { %1320 = sst [smem:[#allocation9_spill]] %s958_s19  ;;  %s1310_s6 = sadd.s32 4294967295, %s1002_s30   ;;  %s1002_s30 = sphi %s1062_s30, %s21_s30   ;;  %s998_s29 = sphi %s1060_s29, %s1349_s29   ;;  %s994_s28 = sphi %s1058_s28, %s1358_s28   ;;  %s990_s27 = sphi %s1056_s27, %s1357_s27   ;;  %s986_s26 = sphi %s1054_s26, %s1356_s26   ;;  %s982_s25 = sphi %s1052_s25, %s1346_s25   ;;  %s978_s24 = sphi %s1050_s24, %s1355_s24   ;;  %s974_s23 = sphi %s1048_s23, %s1354_s23   ;;  %s970_s22 = sphi %s1046_s22, %s1353_s22   ;;  %s966_s21 = sphi %s1044_s21, %s1352_s21   ;;  %s962_s20 = sphi %s1042_s20, %s1351_s20   ;;  %s958_s19 = sphi %s1040_s19, %s1343_s19   ;;  %s954_s18 = sphi %s1038_s18, %s1342_s18  }
   0xf   : > { %1321 = sst [smem:[#allocation10_spill]] %s982_s25  ;;  %s30_s7 = sadd.s32 1, %s994_s28 }
  0x10   : > { %1322 = sst [smem:[#allocation11_spill]] %s998_s29  ;;  %p31_p0 = scmp.ge.s32.totalorder %s30_s7, 2 }
  0x11   : > { %s33_s8 = sadd.s32 1, %s998_s29  ;;  %s68_s9 = sadd.s32 1, %s982_s25 }
  0x12   : > { %p75_p1 = scmp.ne.s32.totalorder %s982_s25, %s978_s24  ;;  %s1360_s7 = smov (%p31_p0, %s30_s7), 0 }
  0x13   : > { %1323 = sst [smem:[#allocation12_spill]] %s1360_s7  ;;  %s1362_s8 = smov (!%p31_p0, %s33_s8), %s998_s29 }
  0x14   : > { %p76_p2 = scmp.eq.s32.totalorder %s1002_s30, 0  ;;  %p81_p3 = scmp.ne.s32.totalorder %s978_s24, %s974_s23 }
  0x15   : > { %p35_p4 = scmp.ge.s32.totalorder %s1362_s8, 2  ;;  %p1114_p5 = scmp.eq.s32.totalorder %s1310_s6, 0 }
  0x16   : > { %p1120_p6 = por %p76_p2, %p75_p1  ;;  %s91_s12 = ssub.s32 %s994_s28, %s1360_s7 }
  0x17   : > { %s1364_s8 = smov (%p35_p4, %s1362_s8), 0  ;;  %p1130_p7 = por %p1114_p5, %p81_p3 }
  0x18   : > { %1326 = sst [smem:[#allocation13_spill]] %s1364_s8  ;;  %p92_p8 = scmp.eq.s32.totalorder %s91_s12, 0 }
  0x19   : > { %s65_s14 = ssub.s32 %s998_s29, %s1364_s8  ;;  %s94_s15 = sadd.s32 1, %s970_s22 }
  0x1a   : > { %p66_p9 = scmp.eq.s32.totalorder %s65_s14, 0  ;;  %p101_p10 = scmp.ne.s32.totalorder %s970_s22, %s966_s21 }
  0x1b   : > { %s1140_s16 = scalar_select %p92_p8, %s970_s22, %s94_s15  }
  0x1c   : > { %s1143_s17 = scalar_select %p66_p9, %s982_s25, %s68_s9  }
  0x1d   : > { %1328 = sst [smem:[#allocation14_spill]] %s1140_s16  ;;  %p1147_p11 = por %p101_p10, %p76_p2 }
  0x1e   : > { %1329 = sst [smem:[#allocation15_spill]] %s1143_s17  ;;  %p107_p12 = scmp.ne.s32.totalorder %s966_s21, %s962_s20 }
  0x1f   : > { %s168_s6 = sor.u32 %s91_s12, %s65_s14  ;;  %s171_s7 = sadd.s32 1, %s958_s19 }
  0x20   : > { %p1156_p13 = por %p107_p12, %p1114_p5  ;;  %p169_p0 = scmp.eq.s32.totalorder %s168_s6, 0 }
  0x21   : > { %p181_p1 = scmp.ne.s32.totalorder %s958_s19, %s954_s18  ;;  %s1332_s15 = sadd.s32 4294967295, %s1002_s30  }
  0x22   : > { %p182_p3 = scmp.eq.s32.totalorder %s1332_s15, 3  ;;  %p722_p4 = scmp.lt.s32.totalorder %s1002_s30, 4 }
  0x23   : > { %s1165_s9 = scalar_select %p169_p0, %s958_s19, %s171_s7  }
  0x24   : > { %p1167_p2 = por %p182_p3, %p181_p1  ;;  %s222_s20 = sand.u32 1, %s982_s25  }
  0x25   : > { %1333 = sst [smem:[#allocation16_spill]] %s1165_s9  ;;  %s661_s10 = sshll.u32 %s222_s20, 2 }
  0x26   : > { %s662_s12 = sshll.u32 %s998_s29, 2  ;;  %s1335_s1 = sld [smem:[#allocation17_spill]] }
  0x27   : > { %s226_s5 = scalar_lea.vmem [#allocation2], %s661_s10  ;;  %p716_p5 = pnand %p722_p4, %p1120_p6 }
  0x28   : > { %s234_s4 = sshll.u32 %s226_s5, 4  ;;  %p1181_p8 = pnand %p722_p4, %p1147_p11  ;;  %s235_s4 = int_to_ptr.vmem [resolvable:$true] %s234_s4 }
  0x29   : > { %p665_p9 = scmp.ge.s32.totalorder %s1002_s30, 1  ;;  %p270_p10 = scmp.lt.s32.totalorder %s1002_s30, 5 }
  0x2a   : > { %s223_s25 = scalar_lea.sflag [#allocation3], %s222_s20  ;;  %s241_s5 = sand.u32 1, %s970_s22  }
  0x2b   : > { %p1187_p12 = pnand %p665_p9, %p270_p10  ;;  %s663_s10 = sshll.u32 %s241_s5, 5 }
  0x2c   : > { %s230_s16 = scalar_lea.hbm %s1335_s1, %s662_s12  ;;  %s245_s1 = scalar_lea.vmem [#allocation4], %s663_s10 }
  0x2d   : > { %s232_s15 = sshll.u32 %s230_s16, 4  ;;  %s664_s16 = sshll.u32 %s994_s28, 2  ;;  %s233_s15 = int_to_ptr.hbm [resolvable:$true] %s232_s15 }
  0x2e   : > { %718 = dma.hbm_to_vmem [thread:$0]  (!%p716_p5), %s233_s15, 64, %s235_s4, %s223_s25  }
  0x2f   : > { %s249_s23 = scalar_lea.hbm %s1306_s2, %s664_s16  ;;  %s252_s29 = sshll.u32 %s245_s1, 4  ;;  %s253_s29 = int_to_ptr.vmem [resolvable:$true] %s252_s29 }
  0x30   : > { %s250_s6 = sshll.u32 %s249_s23, 4  ;;  %s242_s9 = scalar_lea.sflag [#allocation5], %s241_s5  ;;  %s251_s6 = int_to_ptr.hbm [resolvable:$true] %s250_s6 }
  0x31   : > { %s1004_s20 = smov 128   ;;  %s1005_s19 = smov 64  }
  0x32   : > { %s1006_s4 = smov 4   ;;  %274 = sbr.rel (%p1187_p12) target bundleno = 226 (0xe2), region = 40 }
  0x33   : > { %721 = dma.hbm_to_vmem [thread:$0]  (!%p1181_p8), %s251_s6, 512, %s253_s29, %s242_s9, %s1004_s20, %s1005_s19, %s1006_s4  }
  0x34   : > { %s276_s25 = sand.u32 (!%p1187_p12), 1, %s978_s24  }
  0x35   : > { %s1201_s15 = sshll.u32 (!%p1187_p12), %s276_s25, 2  ;;  %s277_s16 = scalar_lea.sflag (!%p1187_p12), [#allocation3], %s276_s25 }
  0x36   : > { %s280_s10 = scalar_lea.vmem (!%p1187_p12), [#allocation2], %s1201_s15 }
  0x37   : > { %945 = dma.done.wait (%p1130_p7), %s277_s16, 64  }
  0x38   : > { %947 = vsyncadd (%p1130_p7), %s277_s16, 4294967232  ;;  %s286_s1 = sand.u32 1, %s966_s21  }
  0x39   : > { %s667_s19 = sshll.u32 %s286_s1, 5  ;;  %s287_s29 = scalar_lea.sflag [#allocation5], %s286_s1 }
  0x3a   : > { %s1209_s9 = scalar_lea.vmem [#allocation4], %s667_s19 }
  0x3b   : > { %949 = dma.done.wait (%p1156_p13), %s287_s29, 512  }
  0x3c   : > { %951 = vsyncadd (%p1156_p13), %s287_s29, 4294966784  ;;  %p337_p6 = scmp.lt.s32.totalorder %s990_s27, 1  ;;  %p339_p7 = scmp.lt.s32.totalorder %s986_s26, 1  ;;  %v407_v0 = vlaneseq  ;;  %v705_v2 = vld [vmem:[%s1209_s9 + $0x18] sm:$0xff]  ;;  %v704_v5 = vld [vmem:[%s1209_s9 + $0x10] sm:$0xff]  ;;  %v1007_v6 = vmov 0.0  }
  0x3d   : > { %s334_s13 = sand.u32 1, %s954_s18   ;;  %396 = vmatpush.bf16.msra.mxu0 %v705_v2  ;;  %vm435_vm1 = vcmask 1042432   ;;  %v703_v9 = vld [vmem:[%s1209_s9 + $0x8] sm:$0xff]  ;;  %s1338_s29 = sld [smem:[#allocation18_spill]]  ;;  %vm428_vm2 = vcmask 48128   ;;  %v702_v13 = vld [vmem:[%s1209_s9] sm:$0xff] }
  0x3e   : > { %s338_s7 = scalar_select %p337_p6, %s990_s27, 1  ;;  %v408_v1 = vshrl.u32 %v407_v0, 7  ;;  %v355_v14 = vld [vmem:[%s280_s10] sm:$0xf]  ;;  %vm388_vm3 = vcmask 523264  }
  0x3f   : > { %s340_s14 = scalar_select %p339_p7, %s986_s26, 1 }
  0x40   : > { %s668_s5 = sshll.u32 %s338_s7, 1  ;;  %s709_s12 = smul.u32 48, %s334_s13 }
  0x41   : > { %s342_s11 = sadd.s32 %s668_s5, %s340_s14  ;;  %397 = vmatpush.bf16.msra.mxu0 %v704_v5  ;;  %s710_s15 = smul.u32 (%p1167_p2), 12, %s990_s27 }
  0x42   : > { %s669_s23 = sshll.u32 %s342_s11, 2  ;;  %s351_s20 = scalar_lea.vmem %s1307_s3, %s342_s11 }
  0x43   : > { %s344_s16 = scalar_lea.vmem %s1304_s0, %s669_s23  ;;  %v831_v4 = vld [vmem:[%s351_s20] ss:$0 sm:$0xff]  ;;  %s1228_s18 = scalar_lea.vmem [#allocation6], %s709_s12 }
  0x44   : > { %v353_v3 = vld [vmem:[%s344_s16] sm:$0xf]  ;;  %vm410_vm0 = vcmp.eq.s32.totalorder %v831_v4, %v408_v1  ;;  %s1339_s13 = smov %s1338_s29  ;;  %s470_s10 = sadd.s32 (%p1167_p2), %s986_s26, %s710_s15 }
  0x45   : > { %354 = vst [vmem:[%s1228_s18] sm:$0xf] %v353_v3  ;;  %v688_v7 = vsel %vm410_vm0, 1.0, %v1007_v6  ;;  %v706_v11 = vld [vmem:[%s1338_s29] sm:$0xff]  ;;  %v707_v12 = vld [vmem:[%s1339_s13 + $0x8] sm:$0xff]  ;;  %398 = vmatpush.bf16.msra.mxu0 %v703_v9  ;;  %s699_s9 = sshll.u32 (%p1167_p2), %s470_s10, 3  ;;  %s1340_s11 = sld [smem:[#allocation19_spill]] (%p1167_p2) }
  0x46   : > { %v413_v8 = vpack.c.bf16 %v688_v7, %v688_v7 }
  0x48   : > { %v437_v10 = vsel %vm435_vm1, %v413_v8, 0 }
  0x49   : > { %446 = vmatpush.bf16.msra.mxu1 %v437_v10  ;;  %708 = vmatpush.bf16.msra.mxu2 %v437_v10 }
  0x4a   : > { %399 = vmatpush.bf16.msra.mxu0 %v702_v13 }
  0x4b   : > { %s472_s23 = scalar_lea.vmem (%p1167_p2), %s1340_s11, %s699_s9 }
  0x4c   : > { %697 = vmatmul.msk.bf16.vlgmr.msra.gmra.mxu1 %vm428_vm2, %v706_v11  ;;  %698 = vmatmul.msk.bf16.vlgmr.msra.gmra.mxu2 %vm428_vm2, %v707_v12 }
  0x4d   : > { %687 = vmatmul.msk.bf16.vlgmr.msra.gmra.mxu0 %vm388_vm3, %v355_v14 }
  0xc9   : > { %v448_v15 = vpop.f32.mrf.mxu1 }
  0xca   : > { %458 = vst [vmem:[%s1228_s18 + $0xc] sm:$0xff] %v448_v15  ;;  %v401_v17 = vpop.f32.mrf.mxu0 }
  0xcb   : > { %405 = vst [vmem:[%s1228_s18 + $0x4] sm:$0xff] %v401_v17 }
  0xcf   : > { %v453_v16 = vpop.f32.mrf.mxu2 }
  0xd0   : > { %460 = vst [vmem:[%s1228_s18 + $0x1c] sm:$0xff] %v453_v16 }
  0xd1   : > { %v450_v18 = vpop.f32.mrf.mxu1 }
  0xd2   : > { %459 = vst [vmem:[%s1228_s18 + $0x14] sm:$0xff] %v450_v18  ;;  %v403_v20 = vpop.f32.mrf.mxu0  ;;  %v511_v21 = vld [vmem:[%s1228_s18] sm:$0xff] (%p1167_p2)  ;;  %v513_v22 = vld [vmem:[%s1228_s18 + $0x8] sm:$0xff] (%p1167_p2) }
  0xd3   : > { %512 = vst [vmem:[%s472_s23] sm:$0xff] (%p1167_p2), %v511_v21 }
  0xd4   : > { %468 = sbr.rel (!%p1167_p2) target bundleno = 226 (0xe2), region = 52  ;;  %514 = vst [vmem:[%s472_s23 + $0x10] sm:$0xff] (%p1167_p2), %v513_v22 }
  0xd7   : > { %v455_v19 = vpop.f32.mrf.mxu2 }
  0xd8   : > { %461 = vst [vmem:[%s1228_s18 + $0x24] sm:$0xff] %v455_v19 }
  0xd9   : > { %v515_v23 = vld [vmem:[%s1228_s18 + $0x10] sm:$0xff]  ;;  %v517_v24 = vld [vmem:[%s1228_s18 + $0x18] sm:$0xff] }
  0xda   : > { %516 = vst [vmem:[%s472_s23 + $0x20] sm:$0xff] %v515_v23 }
  0xdb   : > { %518 = vst [vmem:[%s472_s23 + $0x30] sm:$0xff] %v517_v24 }
  0xdf   : > { %v519_v25 = vld [vmem:[%s1228_s18 + $0x20] sm:$0xff]  ;;  %v521_v26 = vld [vmem:[%s1228_s18 + $0x28] sm:$0xff] }
  0xe0   : > { %520 = vst [vmem:[%s472_s23 + $0x40] sm:$0xff] %v519_v25 }
  0xe1   : > { %522 = vst [vmem:[%s472_s23 + $0x50] sm:$0xff] %v521_v26 }
  0xe2 PF: > { %s21_s30 = sadd.s32 1, %s1002_s30   ;;  %s1342_s18 = sld [smem:[#allocation9_spill]] }
  0xe3   : > { %p1260_p11 = scmp.ge.s32.totalorder %s21_s30, 6   ;;  %s1343_s19 = sld [smem:[#allocation16_spill]] }
  0xe4   : > { %s1344_s27 = sld [smem:[#allocation14_spill]]  ;;  %s1351_s20 = smov %s966_s21 }
  0xe5   : > { %s1345_s17 = sld [smem:[#allocation10_spill]]  ;;  %s1352_s21 = smov %s970_s22 }
  0xe6   : > { %s1346_s25 = sld [smem:[#allocation15_spill]]  ;;  %s1354_s23 = smov %s978_s24 }
  0xe7   : > { %s1347_s6 = sld [smem:[#allocation11_spill]]  ;;  %s1356_s26 = smov %s994_s28 }
  0xe8   : > { %s1348_s8 = sld [smem:[#allocation12_spill]] }
  0xe9   : > { %s1349_s29 = sld [smem:[#allocation13_spill]] }
  0xea   : > { %s1353_s22 = smov %s1344_s27  ;;  %20 = sbr.rel (!%p1260_p11) target bundleno = 14 (0xe), region = 137 }
  0xeb   : > { %s1355_s24 = smov %s1345_s17 }
  0xed   : > { %s1357_s27 = smov %s1347_s6 }
  0xee   : > { %s1358_s28 = smov %s1348_s8 }
  0xef   :  { %538 = vsyncpa [#allocation3], 1 }
  0xf0   :  { %540 = vsyncpa [#allocation3 + $0x1], 1 }
  0xf1   :  { %541 = vsyncpa [#allocation5], 1 }
  0xf2   :  { %543 = vsyncpa [#allocation5 + $0x1], 1 }

</bundles_post_ra>
